<compile_context>
chip_gen: v7x
topology: tpu7x:2x2x1
jax: 0.10.0
libtpu: 0.0.40
codegen_flags: <defaults>
</compile_context>

<pallas_src>
import math

import jax
import jax.numpy as jnp
from jax import lax
from jax.experimental import pallas as pl
from jax.experimental.pallas import tpu as pltpu


def _self_attention_kernel(x_ref, w_ref, b_ref, o_ref):
    # x_ref: (Bt, S, H)   w_ref: (H, 3H)   b_ref: (1, 3H)   o_ref: (1, Bt, S*H)
    Bt, S, H = x_ref.shape

    # Fused Q/K/V projection: one MXU matmul, M = Bt*S rows, N = 3H columns.
    x2 = x_ref[...].reshape(Bt * S, H)
    qkv = jnp.dot(x2, w_ref[...], preferred_element_type=jnp.float32) + b_ref[...]
    qkv = qkv.reshape(Bt, S, 3 * H)
    q = qkv[:, :, 0 * H:1 * H]          # already pre-scaled by 1/sqrt(H)
    k = qkv[:, :, 1 * H:2 * H]
    v = qkv[:, :, 2 * H:3 * H]

    # scores[b, i, j] = sum_d q[b,i,d] * k[b,j,d]  (batched, trans_b on the MXU,
    # no explicit transpose of K).
    scores = lax.dot_general(
        q, k, dimension_numbers=(((2,), (2,)), ((0,), (0,))),
        preferred_element_type=jnp.float32)                      # (Bt, S, S)

    # Numerically-stable softmax; normalization folded into the PV result.
    scores = scores - jnp.max(scores, axis=-1, keepdims=True)
    p = jnp.exp(scores)
    denom = jnp.sum(p, axis=-1, keepdims=True)                   # (Bt, S, 1)

    pv = lax.dot_general(
        p, v, dimension_numbers=(((2,), (1,)), ((0,), (0,))),
        preferred_element_type=jnp.float32)                      # (Bt, S, H)
    out = pv * pl.reciprocal(denom, approx=False)

    # Lane-dense store: last dim S*H is a multiple of 128 -> unmasked vst.
    o_ref[0] = out.reshape(Bt, S * H).astype(o_ref.dtype)


def self_attention(x, wq, bq, wk, bk, wv, bv, *, batch_tile=None):
    """x: (B, S, H) f32. w*: torch-style nn.Linear weights (H, H). b*: (H,)."""
    B, S, H = x.shape
    scale = math.sqrt(H)

    # Glue: fuse the three projections (torch Linear: y = x @ W.T + b) into one
    # (H, 3H) weight / (1, 3H) bias, folding the 1/sqrt(H) score scale into Q.
    w_qkv = jnp.concatenate([wq.T / scale, wk.T, wv.T], axis=1)       # (H, 3H)
    b_qkv = jnp.concatenate([bq / scale, bk, bv]).reshape(1, 3 * H)   # (1, 3H)

    if batch_tile is None:
        # Keep >= 2 grid steps when possible (v7x has 2 TensorCores) while
        # folding as many batch rows as possible into the matmul M dimension.
        batch_tile = B // 2 if (B % 2 == 0 and B >= 2) else 1
    assert B % batch_tile == 0, "batch_tile must divide B"
    num_steps = B // batch_tile

    out3 = pl.pallas_call(
        _self_attention_kernel,
        out_shape=jax.ShapeDtypeStruct((num_steps, batch_tile, S * H), x.dtype),
        grid_spec=pltpu.PrefetchScalarGridSpec(
            num_scalar_prefetch=0,
            grid=(num_steps,),
            in_specs=[
                pl.BlockSpec((batch_tile, S, H), lambda b: (b, 0, 0)),
                pl.BlockSpec((H, 3 * H), lambda b: (0, 0)),       # constant block
                pl.BlockSpec((1, 3 * H), lambda b: (0, 0)),       # constant block
            ],
            out_specs=pl.BlockSpec((1, batch_tile, S * H), lambda b: (b, 0, 0)),
        ),
        compiler_params=pltpu.CompilerParams(
            dimension_semantics=("parallel",)),
    )(x, w_qkv, b_qkv)
    return out3.reshape(B, S, H)


def self_attention_ref(x, wq, bq, wk, bk, wv, bv):
    """Pure-JAX reference reproducing the PyTorch forward."""
    H = x.shape[-1]
    q = x @ wq.T + bq
    k = x @ wk.T + bk
    v = x @ wv.T + bv
    attn = jax.nn.softmax((q @ jnp.swapaxes(k, -2, -1)) / math.sqrt(H), axis=-1)
    return attn @ v


if __name__ == "__main__":
    B, S, H = 2, 8, 32

    key = jax.random.PRNGKey(0)
    kx, kwq, kbq, kwk, kbk, kwv, kbv = jax.random.split(key, 7)

    x = jax.random.normal(kx, (B, S, H), dtype=jnp.float32)

    # nn.Linear-style parameters: weight (H, H), bias (H,).
    bound = 1.0 / math.sqrt(H)
    wq = jax.random.uniform(kwq, (H, H), jnp.float32, -bound, bound)
    bq = jax.random.uniform(kbq, (H,), jnp.float32, -bound, bound)
    wk = jax.random.uniform(kwk, (H, H), jnp.float32, -bound, bound)
    bk = jax.random.uniform(kbk, (H,), jnp.float32, -bound, bound)
    wv = jax.random.uniform(kwv, (H, H), jnp.float32, -bound, bound)
    bv = jax.random.uniform(kbv, (H,), jnp.float32, -bound, bound)

    out = self_attention(x, wq, bq, wk, bk, wv, bv)
    jax.block_until_ready(out)

    ref = self_attention_ref(x, wq, bq, wk, bk, wv, bv)
    assert out.shape == (B, S, H)
    assert jnp.allclose(out, ref, atol=1e-5, rtol=1e-5), "mismatch vs reference"

    print("KERNEL_OK")
</pallas_src>

<mosaic_0001>
module attributes {stable_mosaic.version = 11 : i64} {
  func.func @_self_attention_kernel(%arg0: i32, %arg1: memref<1x8x32xf32, #tpu.memory_space<vmem>>, %arg2: memref<32x96xf32, #tpu.memory_space<vmem>>, %arg3: memref<1x96xf32, #tpu.memory_space<vmem>>, %arg4: memref<1x1x256xf32, #tpu.memory_space<vmem>>) attributes {dimension_semantics = [#tpu.dimension_semantics<parallel>], iteration_bounds = array<i64: 2>, scalar_prefetch = 0 : i64, scratch_operands = 0 : i64, tpu.core_type = #tpu.core_type<tc>, window_params = [{transform_indices = @transform_0, window_bounds = array<i64: 1, 8, 32>}, {pipeline_mode = #tpu.pipeline_mode<synchronous>, transform_indices = @transform_1, window_bounds = array<i64: 32, 96>}, {pipeline_mode = #tpu.pipeline_mode<synchronous>, transform_indices = @transform_2, window_bounds = array<i64: 1, 96>}, {transform_indices = @transform_3, window_bounds = array<i64: 1, 1, 256>}]} {
    %c0 = arith.constant 0 : index
    %c0_0 = arith.constant 0 : index
    %c0_1 = arith.constant 0 : index
    %0 = vector.load %arg1[%c0, %c0_0, %c0_1] : memref<1x8x32xf32, #tpu.memory_space<vmem>>, vector<1x8x32xf32>
    %1 = vector.shape_cast %0 : vector<1x8x32xf32> to vector<8x32xf32>
    %c0_2 = arith.constant 0 : index
    %c0_3 = arith.constant 0 : index
    %2 = vector.load %arg2[%c0_2, %c0_3] : memref<32x96xf32, #tpu.memory_space<vmem>>, vector<32x96xf32>
    %cst = arith.constant dense<0.000000e+00> : vector<8x96xf32>
    %3 = tpu.matmul %1, %2, %cst {dimension_numbers = #tpu.dot_dimension_numbers<[1], [0], [0], [1], [0, 0, 1, 1], [], []>} : vector<8x32xf32>, vector<32x96xf32>, vector<8x96xf32> -> vector<8x96xf32>
    %c0_4 = arith.constant 0 : index
    %c0_5 = arith.constant 0 : index
    %4 = vector.load %arg3[%c0_4, %c0_5] : memref<1x96xf32, #tpu.memory_space<vmem>>, vector<1x96xf32>
    %5 = vector.broadcast %4 : vector<1x96xf32> to vector<8x96xf32>
    %6 = arith.addf %3, %5 : vector<8x96xf32>
    %7 = vector.shape_cast %6 : vector<8x96xf32> to vector<1x8x96xf32>
    %8 = vector.extract_strided_slice %7 {offsets = [0, 0, 0], sizes = [1, 8, 32], strides = [1, 1, 1]} : vector<1x8x96xf32> to vector<1x8x32xf32>
    %9 = vector.extract_strided_slice %7 {offsets = [0, 0, 32], sizes = [1, 8, 32], strides = [1, 1, 1]} : vector<1x8x96xf32> to vector<1x8x32xf32>
    %10 = vector.extract_strided_slice %7 {offsets = [0, 0, 64], sizes = [1, 8, 32], strides = [1, 1, 1]} : vector<1x8x96xf32> to vector<1x8x32xf32>
    %cst_6 = arith.constant dense<0.000000e+00> : vector<1x8x8xf32>
    %11 = tpu.matmul %8, %9, %cst_6 {dimension_numbers = #tpu.dot_dimension_numbers<[2], [2], [1], [1], [0, 0, 0, 1, 1, 1], [0], [0]>} : vector<1x8x32xf32>, vector<1x8x32xf32>, vector<1x8x8xf32> -> vector<1x8x8xf32>
    %cst_7 = arith.constant dense<0xFF800000> : vector<1x8xf32>
    %12 = vector.multi_reduction <maximumf>, %11, %cst_7 [2] : vector<1x8x8xf32> to vector<1x8xf32>
    %13 = vector.shape_cast %12 : vector<1x8xf32> to vector<1x8x1xf32>
    %14 = vector.broadcast %13 : vector<1x8x1xf32> to vector<1x8x8xf32>
    %15 = arith.subf %11, %14 : vector<1x8x8xf32>
    %16 = math.exp %15 : vector<1x8x8xf32>
    %cst_8 = arith.constant dense<0.000000e+00> : vector<1x8xf32>
    %17 = vector.multi_reduction <add>, %16, %cst_8 [2] : vector<1x8x8xf32> to vector<1x8xf32>
    %18 = vector.shape_cast %17 : vector<1x8xf32> to vector<1x8x1xf32>
    %cst_9 = arith.constant dense<0.000000e+00> : vector<1x8x32xf32>
    %19 = tpu.matmul %16, %10, %cst_9 {dimension_numbers = #tpu.dot_dimension_numbers<[2], [1], [1], [2], [0, 0, 0, 1, 1, 2], [0], [0]>} : vector<1x8x8xf32>, vector<1x8x32xf32>, vector<1x8x32xf32> -> vector<1x8x32xf32>
    %20 = tpu.reciprocal %18 : vector<1x8x1xf32> -> vector<1x8x1xf32>
    %21 = vector.broadcast %20 : vector<1x8x1xf32> to vector<1x8x32xf32>
    %22 = arith.mulf %19, %21 : vector<1x8x32xf32>
    %23 = vector.shape_cast %22 : vector<1x8x32xf32> to vector<1x256xf32>
    %c0_10 = arith.constant 0 : index
    %c0_11 = arith.constant 0 : index
    %c0_12 = arith.constant 0 : index
    %24 = vector.load %arg4[%c0_10, %c0_11, %c0_12] : memref<1x1x256xf32, #tpu.memory_space<vmem>>, vector<1x1x256xf32>
    %25 = vector.shape_cast %24 : vector<1x1x256xf32> to vector<1x256xf32>
    %26 = vector.shape_cast %23 : vector<1x256xf32> to vector<1x1x256xf32>
    tpu.vector_store %arg4[%c0_10, %c0_11, %c0_12], %26 {strides = array<i32>} : memref<1x1x256xf32, #tpu.memory_space<vmem>>, vector<1x1x256xf32>,
    return
  }
  func.func @transform_0(%arg0: i32) -> (i32, i32, i32) {
    %c0_i32 = arith.constant 0 : i32
    %c0_i32_0 = arith.constant 0 : i32
    %c0_i32_1 = arith.constant 0 : i32
    return %arg0, %c0_i32, %c0_i32_0 : i32, i32, i32
  }
  func.func @transform_1(%arg0: i32) -> (i32, i32) {
    %c0_i32 = arith.constant 0 : i32
    %c0_i32_0 = arith.constant 0 : i32
    %c0_i32_1 = arith.constant 0 : i32
    return %c0_i32, %c0_i32_0 : i32, i32
  }
  func.func @transform_2(%arg0: i32) -> (i32, i32) {
    %c0_i32 = arith.constant 0 : i32
    %c0_i32_0 = arith.constant 0 : i32
    %c0_i32_1 = arith.constant 0 : i32
    return %c0_i32, %c0_i32_0 : i32, i32
  }
  func.func @transform_3(%arg0: i32) -> (i32, i32, i32) {
    %c0_i32 = arith.constant 0 : i32
    %c0_i32_0 = arith.constant 0 : i32
    %c0_i32_1 = arith.constant 0 : i32
    return %arg0, %c0_i32, %c0_i32_0 : i32, i32, i32
  }
}

</mosaic_0001>

<bundles_post_ra>
// kernel: tpu_custom_call.1
= control target key start
LH: loop header
LB: loop body
LE: loop exit
PB: predicated region body
PF: predicated region fallthrough
CT: control target
= control target key end

     0   :  { %8 = vsyncpa [#allocation3], 0  ;;  %s1170_s0 = inlined_call_operand.hbm [shape: f32[2,8,32], index: 0, kind: input, shape index: {}]   ;;  %s1171_s1 = inlined_call_operand.hbm [shape: f32[32,96], index: 1, kind: input, shape index: {}]   ;;  %s1172_s2 = inlined_call_operand.vmem [shape: f32[1,96], index: 2, kind: input, shape index: {}]   ;;  %s1173_s3 = inlined_call_operand.hbm [shape: f32[2,1,256], index: 3, kind: output, shape index: {}]  }
   0x1   :  { %10 = vsyncpa [#allocation3 + $0x1], 0 }
   0x2   :  { %11 = vsyncpa [#allocation6], 0 }
   0x3   :  { %12 = vsyncpa [#allocation4], 0 }
   0x4   :  { %14 = vsyncpa [#allocation4 + $0x1], 0  ;;  %s944_s12 = smov 0   ;;  %s946_s13 = smov 0  }
   0x5   :  { %s948_s14 = smov 0   ;;  %s950_s15 = smov 0  }
   0x6 LB: > { %s965_s16 = sadd.s32 4294967295, %s908_s15   ;;  %s651_s17 = sadd.s32 4294967294, %s908_s15   ;;  %s908_s15 = sphi %s950_s15, %s1193_s15   ;;  %s904_s14 = sphi %s948_s14, %s1192_s14   ;;  %s900_s13 = sphi %s946_s13, %s1191_s13   ;;  %s896_s12 = sphi %s944_s12, %s1190_s12  }
   0x7   : > { %p40_p0 = scmp.ne.s32.totalorder %s900_s13, %s896_s12  ;;  %p1174_p1 = scmp.eq.s32.totalorder %s965_s16, 0 }
   0x8   : > { %p112_p3 = scmp.eq.s32.totalorder %s651_s17, 1  ;;  %p652_p5 = scmp.ge.s32.totalorder %s908_s15, 1 }
   0x9   : > { %p974_p4 = por %p1174_p1, %p40_p0  ;;  %p119_p7 = scmp.lt.s32.totalorder %s908_s15, 3 }
   0xa   : > { %p979_p6 = por %p112_p3, %p40_p0  ;;  %s910_s21 = smov [#allocation5]  }
   0xb   : > { %s1177_s18 = scalar_select %p974_p4, 1, 0 }
   0xc   : > { %s1178_s19 = scalar_select %p979_p6, 1, 0 }
   0xd   : > { %p984_p8 = pnand %p652_p5, %p119_p7  ;;  %s131_s22 = sshll.u32 %s910_s21, 4  ;;  %s988_s22 = int_to_ptr.vmem [resolvable:$true] %s131_s22 }
   0xe   : > { %s1000_s24 = sadd.s32 1, %s908_s15   ;;  %s27_s25 = sadd.s32 1, %s904_s14 }
   0xf   : > { %s1179_s20 = scalar_select %p984_p8, 1, 0 }
  0x10   : > { %p716_p9 = pneg %p984_p8  ;;  %s24_s26 = ssub.s32 %s908_s15, %s1000_s24 }
  0x11   : > { %s780_s29 = scalar_lea.hbm %s1171_s1, 512 }
  0x12   : > { %p995_p11 = pnand %p716_p9, %p1174_p1  ;;  %p781_p12 = scmp.ne.s32.totalorder %s1171_s1, %s780_s29 }
  0x13   : > { %p787_p5 = scmp.lt.u32.totalorder %s780_s29, %s1171_s1 }
  0x14   : > { %p782_p13 = pneg %p995_p11 }
  0x16   : > { %p783_p0 = pnand %p782_p13, %p781_p12 }
  0x18   : > { %p784_p3 = pneg %p783_p0 }
  0x1a   : > { %p789_p7 = pnand %p787_p5, %p784_p3 }
  0x1c   : > { %792 = shalt.err (!%p789_p7)
}
  0x1d   : > { %s793_s7 = scalar_lea.vmem %s988_s22, 512  ;;  %p801_p2 = scmp.lt.s32.totalorder %s988_s22, %s988_s22 }
  0x1e   : > { %p794_p9 = scmp.ne.s32.totalorder %s988_s22, %s793_s7  ;;  %p802_p6 = scmp.lt.s32.totalorder %s793_s7, %s793_s7 }
  0x20   : > { %p796_p10 = pnand %p794_p9, %p782_p13  ;;  %p803_p4 = por %p802_p6, %p801_p2 }
  0x22   : > { %p797_p1 = pneg %p796_p10 }
  0x24   : > { %p804_p8 = pnand %p803_p4, %p797_p1 }
  0x26   : > { %807 = shalt.err (!%p804_p8)
}
  0x27   : > { %s911_s8 = smov 128   ;;  %s912_s9 = smov 8  }
  0x28   : > { %719 = dma.hbm_to_vmem [thread:$0]  (!%p995_p11), %s1171_s1, 512, %s988_s22, [#allocation6], %s911_s8, %s911_s8, %s912_s9  }
  0x29   : > { %p25_p2 = scmp.eq.s32.totalorder %s24_s26, 0  ;;  %p34_p1 = scmp.ne.s32.totalorder %s904_s14, %s900_s13 }
  0x2a   : > { %p35_p4 = scmp.eq.s32.totalorder %s908_s15, 0  ;;  %p729_p6 = scmp.lt.s32.totalorder %s908_s15, 2 }
  0x2b   : > { %s1031_s17 = scalar_select %p25_p2, %s904_s14, %s27_s25  }
  0x2c   : > { %p36_p8 = por %p35_p4, %p34_p1  ;;  %p1181_p10 = scmp.eq.s32.totalorder %s965_s16, 1 }
  0x2d   : > { %s148_s27 = sand.u32 1, %s904_s14   ;;  %s656_s28 = sshll.u32 %s908_s15, 7 }
  0x2e   : > { %p1035_p12 = por %p1181_p10, %p34_p1  ;;  %s655_s29 = sshll.u32 %s148_s27, 3 }
  0x2f   : > { %s1044_s4 = scalar_lea.hbm %s1170_s0, %s656_s28  ;;  %s152_s22 = scalar_lea.vmem [#allocation2], %s655_s29 }
  0x30   : > { %s159_s25 = sshll.u32 %s152_s22, 4  ;;  %p1046_p11 = pnand %p729_p6, %p36_p8  ;;  %s1050_s25 = int_to_ptr.vmem [resolvable:$true] %s159_s25 }
  0x31   : > { %s149_s5 = scalar_lea.sflag [#allocation3], %s148_s27  ;;  %s808_s6 = scalar_lea.hbm %s1044_s4, 128 }
  0x32   : > { %p809_p13 = scmp.ne.s32.totalorder %s1044_s4, %s808_s6  ;;  %p810_p0 = pneg %p1046_p11 }
  0x33   : > { %s813_s9 = scalar_lea.hbm %s1170_s0, 256  ;;  %p814_p7 = scmp.lt.u32.totalorder %s1044_s4, %s1170_s0 }
  0x34   : > { %p811_p3 = pnand %p810_p0, %p809_p13  ;;  %p815_p9 = scmp.lt.u32.totalorder %s813_s9, %s808_s6 }
  0x35   : > { %p817_p1 = scmp.lt.u32.totalorder %s808_s6, %s1044_s4 }
  0x36   : > { %p812_p5 = pneg %p811_p3  ;;  %p816_p2 = por %p815_p9, %p814_p7 }
  0x38   : > { %p818_p4 = por %p817_p1, %p816_p2 }
  0x3a   : > { %p819_p6 = pnand %p818_p4, %p812_p5 }
  0x3c   : > { %822 = shalt.err (!%p819_p6)
}
  0x3d   : > { %s823_s27 = scalar_lea.vmem %s1050_s25, 128  ;;  %s913_s28 = smov [#allocation2]  }
  0x3e   : > { %p824_p8 = scmp.ne.s32.totalorder %s1050_s25, %s823_s27  ;;  %s828_s29 = sshll.u32 %s913_s28, 4  ;;  %s829_s29 = int_to_ptr.vmem [resolvable:$false] %s828_s29 }
  0x3f   : > { %s830_s23 = scalar_lea.vmem %s829_s29, 256  ;;  %p831_p3 = scmp.lt.s32.totalorder %s1050_s25, %s829_s29 }
  0x40   : > { %p826_p10 = pnand %p824_p8, %p810_p0  ;;  %p832_p7 = scmp.lt.s32.totalorder %s830_s23, %s823_s27 }
  0x42   : > { %p827_p13 = pneg %p826_p10  ;;  %p833_p9 = por %p832_p7, %p831_p3 }
  0x44   : > { %p834_p2 = pnand %p833_p9, %p827_p13 }
  0x46   : > { %837 = shalt.err (!%p834_p2)
}
  0x47   : > { %723 = dma.hbm_to_vmem [thread:$0]  (!%p1046_p11), %s1044_s4, 128, %s1050_s25, %s149_s5  }
  0x48   : > { %p1184_p5 = scmp.ne.s32.totalorder %s1179_s20, 0 }
  0x49   : > { %s1080_s30 = sand.u32 (!%p1184_p5), 1, %s900_s13   ;;  %p1185_p0 = scmp.ne.s32.totalorder (!%p1184_p5), %s1177_s18, 0 }
  0x4a   : > { %168 = sbr.rel (%p1184_p5) target bundleno = 1163 (0x48b), region = 32  ;;  %s658_s22 = sshll.u32 (!%p1184_p5), %s1080_s30, 3 }
  0x4b   : > { %s171_s6 = scalar_lea.sflag (!%p1184_p5), [#allocation3], %s1080_s30  ;;  %s174_s7 = scalar_lea.vmem (!%p1184_p5), [#allocation2], %s658_s22 }
  0x51   : > { %883 = dma.done.wait (%p1185_p0), %s171_s6, 128  }
  0x52   : > { %885 = vsyncadd (%p1185_p0), %s171_s6, 4294967168  ;;  %p1186_p1 = scmp.eq.s32.totalorder %s965_s16, 0 }
  0x54   : > { %887 = dma.done.wait (%p1186_p1), [#allocation6], 512   ;;  %p1187_p11 = pmov %p1186_p1 }
  0x55   : > { %v914_v0 = vmov 0.0|0.0   ;;  %vm915_vm0 = vmmov 0   ;;  %v916_v1 = vmov 0.0   ;;  %v202_v2 = vld [vmem:[#allocation5] sm:$0xff]  ;;  %v203_v3 = vld [vmem:[#allocation5 + $0x8] sm:$0xff]  ;;  %v204_v4 = vld [vmem:[#allocation5 + $0x10] sm:$0xff]  ;;  %v456_v26 = vlaneseq }
  0x56   : > { %889 = vsyncadd (%p1187_p11), [#allocation6], 4294966784  ;;  %702 = vmatprep.subr.bf16.mxu0 %v914_v0  ;;  %689 = vmatprep.mubr.msk.f32.mxu0 %vm915_vm0, %v916_v1  ;;  %v703_v5 = vpack.c.bf16 %v203_v3, %v202_v2  ;;  %v205_v6 = vld [vmem:[#allocation5 + $0x18] sm:$0xff]  ;;  %vm213_vm1 = vcmask 261120   ;;  %v661_v9 = vld [vmem:[%s1172_s2] ss:$0 sm:$0xff] }
  0x57   : > { %692 = vmatprep.subr.mxu1 %v916_v1  ;;  %694 = vmatprep.mubr.msk.f32.mxu1 %vm915_vm0, %v916_v1  ;;  %v706_v7 = vpack.c.bf16 %v205_v6, %v204_v4  ;;  %v201_v8 = vld [vmem:[%s174_s7] sm:$0xff]  ;;  %s917_s4 = smov 64   ;;  %s918_s25 = smov 96   ;;  %vm364_vm2 = vcmask 64512   ;;  %v919_v24 = vmov 1983009808  }
  0x58   : > { %704 = vmatpush3.bf16.msra.mxu0 %v703_v5  ;;  %v454_v25 = vunpack.c.l.s4 %v919_v24  ;;  %v920_v27 = vmov 1934713408   ;;  %v457_v30 = vshrl.u32 %v456_v26, 7  ;;  %s921_s26 = smov 32   ;;  %v922_v53 = vmov 1966171168  }
  0x59   : > { %705 = vmatprep.subr.bf16.mxu0 %v914_v0  ;;  %v469_v28 = vunpack.c.l.s4 %v920_v27  ;;  %v537_v54 = vunpack.c.l.s4 %v922_v53  ;;  %vm526_vm3 = vcmask 523264   ;;  %s660_s5 = sshll.u32 %s1080_s30, 1  ;;  %vm528_vm4 = vcmask 785408   ;;  %s671_s8 = sshll.u32 %s965_s16, 5 }
  0x5a   : > { %v455_v29 = vunpack.c.0.s8 %v454_v25  ;;  %s200_s9 = scalar_lea.vmem [#allocation7], %s660_s5  ;;  %vm553_vm5 = vcmp.lt.s32.totalorder %v456_v26, 256  ;;  %s1126_s28 = scalar_lea.hbm %s1173_s3, %s671_s8 }
  0x5b   : > { %v470_v31 = vunpack.c.0.s8 %v469_v28  ;;  %v538_v57 = vunpack.c.0.s8 %v537_v54  ;;  %s571_s10 = sshll.u32 %s200_s9, 4  ;;  %s557_s29 = scalar_lea.sflag [#allocation4], %s1080_s30  ;;  %s1128_s10 = int_to_ptr.vmem [resolvable:$true] %s571_s10 }
  0x5c   : > { %707 = vmatpush3.bf16.msra.mxu0 %v706_v7  ;;  %v458_v32 = vsub.s32 %v455_v29, %v457_v30  ;;  %s838_s23 = scalar_lea.vmem %s1128_s10, 32  ;;  %s923_s16 = smov [#allocation7]  }
  0x5d   : > { %v473_v36 = vsub.s32 %v470_v31, %v457_v30  ;;  %v541_v63 = vsub.s32 %v538_v57, %v457_v30  ;;  %p839_p4 = scmp.ne.s32.totalorder %s1128_s10, %s838_s23  ;;  %s842_s22 = sshll.u32 %s923_s16, 4  ;;  %s843_s22 = int_to_ptr.vmem [resolvable:$false] %s842_s22 }
  0x5e   : > { %s844_s6 = scalar_lea.vmem %s843_s22, 64  ;;  %p845_p10 = scmp.lt.s32.totalorder %s1128_s10, %s843_s22 }
  0x5f   : > { %690 = vmatmul.mubr.msk.f32.vlgmr.msra.gmra.mrb[0].mxu0 %vm213_vm1, %v201_v8  ;;  %p840_p6 = pnand %p839_p4, %p1035_p12  ;;  %p846_p13 = scmp.lt.s32.totalorder %s844_s6, %s838_s23 }
  0x61   : > { %p841_p8 = pneg %p840_p6  ;;  %p847_p3 = por %p846_p13, %p845_p10 }
  0x63   : > { %p848_p7 = pnand %p847_p3, %p841_p8 }
 0x132   : > { %v283_v10 = vpop.f32.mrb[0].mxu0 }
 0x133   : > { %v284_v11 = vadd.f32 %v661_v9, %v283_v10  ;;  %v691_v12 = vpop.f32.mrb[1].mxu0 }
 0x135   : > { %374 = vrot.lane.b32.xlu1 %v284_v11, %s917_s4  ;;  %288 = vrot.lane.b32.xlu0 %v284_v11, %s918_s25 }
 0x1a7   : > { %v289_v13 = vpop.permute.xlu0 %288  ;;  %v375_v14 = vpop.permute.xlu1 %374 }
 0x1a8   : > { %693 = vmatpush3.xpose.msk.msra.mxu1 %vm213_vm1, %v289_v13 }
 0x1a9   : > { %697 = vmatprep.subr.mxu1 %v916_v1 }
 0x1ab   : > { %695 = vmatmul.mubr.msk.f32.vlgmr.msra.gmra.mrb[0].mxu1 %vm213_vm1, %v284_v11 }
 0x1ac   : > { %698 = vmatpush3.msra.mxu1 %v375_v14  ;;  %699 = vmatprep.mubr.msk.f32.mxu1 %vm915_vm0, %v916_v1 }
 0x27e   : > { %v360_v15 = vpop.f32.mrb[0].mxu1 }
 0x27f   : > { %v696_v16 = vpop.f32.mrb[1].mxu1  ;;  %v365_v17 = vsel %vm364_vm2, %v360_v15, -inf }
 0x280   : > { %366 = vmax.xlane.f32.xlu0 %v365_v17 }
 0x30d   : > { %v367_v18 = vpop.xlane.xlu0 %366 }
 0x30e   : > { %v368_v19 = vsub.f32 %v360_v15, %v367_v18 }
 0x310   : > { %v369_v20 = vmul.f32 1.442695, %v368_v19 }
 0x312   : > { %776 = vpow2.f32 %v369_v20 }
 0x31c   : > { %v777_v21 = vpop.eup %776 }
 0x31d   : > { %700 = vmatmul.mubr.msk.f32.vlgmr.msra.gmra.mrb[2].mxu1 %vm364_vm2, %v777_v21  ;;  %v371_v22 = vsel %vm364_vm2, %v777_v21, 0.0 }
 0x31e   : > { %372 = vadd.xlane.f32.xlu1 %v371_v22 }
 0x3ab   : > { %v373_v23 = vpop.xlane.xlu1 %372 }
 0x3ac   : > { %778 = vrcp.f32 %v373_v23 }
 0x3b6   : > { %v779_v33 = vpop.eup %778 }
 0x3f0   : > { %v446_v34 = vpop.f32.mrb[2].mxu1 }
 0x3f1   : > { %v451_v35 = vmul.f32 %v779_v33, %v446_v34  ;;  %v701_v37 = vpop.f32.mrb[3].mxu1 }
 0x3f3   : > { %v452_v38 = vcombine.high %v451_v35, %v916_v1  ;;  %v459_v39 = vrot.slane %v451_v35, %v458_v32 }
 0x3f5   : > { %v466_v40 = vrot.slane %v452_v38, %v458_v32  ;;  %v474_v41 = vrot.slane %v459_v39, %v473_v36  ;;  %v467_v42 = vcombine.high %v459_v39, %v916_v1 }
 0x3f7   : > { %v497_v43 = vcombine.high %v474_v41, %v916_v1  ;;  %v489_v44 = vrot.slane %v466_v40, %v473_v36  ;;  %v482_v46 = vcombine.high %v466_v40, %v916_v1  ;;  %v481_v47 = vrot.slane %v467_v42, %v473_v36 }
 0x3f9   : > { %502 = vrot.lane.b32.xlu0 %v497_v43, %s921_s26  ;;  %v499_v45 = vcombine.high %v489_v44, %v916_v1  ;;  %v496_v48 = vrot.slane %v482_v46, %v473_v36  ;;  %v498_v49 = vcombine.high %v481_v47, %v916_v1 }
 0x3fb   : > { %514 = vrot.lane.b32.xlu1 %v499_v45, %s921_s26  ;;  %v500_v50 = vcombine.high %v496_v48, %v916_v1 }
 0x3fd   : > { %506 = vrot.lane.b32.xlu0 %v481_v47, %s917_s4 }
 0x3ff   : > { %518 = vrot.lane.b32.xlu1 %v496_v48, %s917_s4 }
 0x401   : > { %510 = vrot.lane.b32.xlu0 %v498_v49, %s918_s25 }
 0x403   : > { %522 = vrot.lane.b32.xlu1 %v500_v50, %s918_s25 }
 0x46b   : > { %v503_v51 = vpop.permute.xlu0 %502 }
 0x46c   : > { %v525_v59 = vsel %vm213_vm1, %v474_v41, %v503_v51 }
 0x46d   : > { %v515_v52 = vpop.permute.xlu1 %514 }
 0x46e   : > { %v530_v60 = vsel %vm213_vm1, %v489_v44, %v515_v52 }
 0x46f   : > { %v507_v55 = vpop.permute.xlu0 %506 }
 0x470   : > { %v527_v61 = vsel %vm526_vm3, %v525_v59, %v507_v55 }
 0x471   : > { %v519_v56 = vpop.permute.xlu1 %518 }
 0x472   : > { %v531_v62 = vsel %vm526_vm3, %v530_v60, %v519_v56 }
 0x473   : > { %v511_v58 = vpop.permute.xlu0 %510 }
 0x474   : > { %v529_v1 = vsel %vm528_vm4, %v527_v61, %v511_v58 }
 0x475   : > { %v523_v0 = vpop.permute.xlu1 %522 }
 0x476   : > { %v532_v2 = vsel %vm528_vm4, %v531_v62, %v523_v0 }
 0x477   : > { %v535_v3 = vcombine.low %v529_v1, %v532_v2 }
 0x479   : > { %v542_v4 = vrot.slane %v535_v3, %v541_v63 }
 0x47b   : > { %v549_v5 = vrot.slane %v542_v4, %v541_v63 }
 0x47d   : > { %555 = vst.msk [vmem:[%s200_s9] sm:$0x3] %vm553_vm5, %v549_v5 }
 0x47e   : > { %851 = shalt.err (!%p848_p7)
}
 0x47f   : > { %s852_s30 = scalar_lea.hbm %s1126_s28, 32  ;;  %s856_s20 = scalar_lea.hbm %s1173_s3, 64 }
 0x480   : > { %p853_p9 = scmp.ne.s32.totalorder %s1126_s28, %s852_s30  ;;  %p857_p0 = scmp.lt.u32.totalorder %s1126_s28, %s1173_s3 }
 0x481   : > { %p858_p1 = scmp.lt.u32.totalorder %s856_s20, %s852_s30  ;;  %p860_p4 = scmp.lt.u32.totalorder %s852_s30, %s1126_s28 }
 0x482   : > { %p854_p2 = pnand %p853_p9, %p1035_p12 }
 0x483   : > { %p859_p11 = por %p858_p1, %p857_p0 }
 0x484   : > { %p855_p5 = pneg %p854_p2 }
 0x485   : > { %p861_p6 = por %p860_p4, %p859_p11 }
 0x487   : > { %p862_p8 = pnand %p861_p6, %p855_p5 }
 0x489   : > { %865 = shalt.err (!%p862_p8)
}
 0x48a   : > { %714 = dma.vmem_to_hbm [thread:$0]  (%p1035_p12), %s1128_s10, 32, %s1126_s28, %s557_s29  }
 0x48b PF: > { %s583_s26 = sand.u32 1, %s896_s12   ;;  %p1188_p10 = scmp.ne.s32.totalorder %s1178_s19, 0 }
 0x48c   : > { %p1189_p13 = scmp.ge.s32.totalorder %s908_s15, 2  ;;  %s584_s5 = scalar_lea.sflag [#allocation4], %s583_s26 }
 0x48e   : > { %p725_p3 = pnand %p1189_p13, %p1188_p10 }
 0x490   : > { %891 = dma.done.wait (!%p725_p3), %s584_s5, 32  }
 0x491   : > { %893 = vsyncadd (!%p725_p3), %s584_s5, 4294967264  ;;  %p17_p7 = scmp.ge.s32.totalorder %s1000_s24, 4   ;;  %s1190_s12 = smov %s900_s13 }
 0x492   : > { %s1191_s13 = smov %s904_s14  ;;  %s1192_s14 = smov %s1031_s17 }
 0x493   : > { %s1193_s15 = smov %s1000_s24  ;;  %19 = sbr.rel (!%p17_p7) target bundleno = 6 (0x6), region = 81 }
 0x49a   :  { %589 = vsyncpa [#allocation3], 1 }
 0x49b   :  { %591 = vsyncpa [#allocation3 + $0x1], 1 }
 0x49c   :  { %592 = vsyncpa [#allocation6], 1 }
 0x49d   :  { %593 = vsyncpa [#allocation4], 1 }
 0x49e   :  { %595 = vsyncpa [#allocation4 + $0x1], 1 }

</bundles_post_ra>
